<compile_context>
chip_gen: v7x
topology: tpu7x:2x2x1
jax: 0.10.0
libtpu: 0.0.40
codegen_flags: <defaults>
</compile_context>

<pallas_src>
import functools

import jax
import jax.numpy as jnp
from jax.experimental import pallas as pl
from jax.experimental.pallas import tpu as pltpu


# ----------------------------------------------------------------------------
# Fused ChildSum-LSTM cell kernel (one grid step == one tree node)
# ----------------------------------------------------------------------------
def _childsum_cell_kernel(x_ref, cc_ref, ch_ref,
                          wioux_ref, bioux_ref, wiouh_ref, biouh_ref,
                          wfx_ref, bfx_ref, wfh_ref, bfh_ref,
                          c_ref, h_ref, *, mem_dim):
    x = x_ref[0]                                   # (1, in_dim)
    cc = cc_ref[0]                                 # (max_children, mem_dim)
    ch = ch_ref[0]                                 # (max_children, mem_dim)

    # child_h_sum = sum(child_h, dim=0, keepdim=True)
    ch_sum = jnp.sum(ch, axis=0, keepdims=True)    # (1, mem_dim)

    # iou = ioux(x) + iouh(child_h_sum)
    iou = (jnp.dot(x, wioux_ref[...], preferred_element_type=jnp.float32)
           + bioux_ref[...]
           + jnp.dot(ch_sum, wiouh_ref[...], preferred_element_type=jnp.float32)
           + biouh_ref[...])                       # (1, 3*mem_dim)
    i = jax.nn.sigmoid(iou[:, 0:mem_dim])
    o = jax.nn.sigmoid(iou[:, mem_dim:2 * mem_dim])
    u = jnp.tanh(iou[:, 2 * mem_dim:3 * mem_dim])

    # f = sigmoid(fh(child_h) + fx(x).repeat(n_children, 1))
    fx = jnp.dot(x, wfx_ref[...], preferred_element_type=jnp.float32) + bfx_ref[...]
    f = jax.nn.sigmoid(
        jnp.dot(ch, wfh_ref[...], preferred_element_type=jnp.float32)
        + bfh_ref[...] + fx)                       # fx broadcasts over child rows
    fc = f * cc

    c = i * u + jnp.sum(fc, axis=0, keepdims=True)  # (1, mem_dim)
    h = o * jnp.tanh(c)

    c_ref[0] = c
    h_ref[0] = h


def childsum_lstm_cell_batch(x, child_c, child_h, params):
    """Run the ChildSum LSTM cell for a batch of independent nodes.

    x        : (n_nodes, 1, in_dim)
    child_c  : (n_nodes, max_children, mem_dim)   (zero-padded child slots are exact)
    child_h  : (n_nodes, max_children, mem_dim)
    returns  : c, h each (n_nodes, mem_dim)
    """
    n_nodes, _, in_dim = x.shape
    _, max_children, mem_dim = child_c.shape

    const2d = lambda n: (0, 0)   # weights / biases: same block for every node
    kernel = functools.partial(_childsum_cell_kernel, mem_dim=mem_dim)

    c, h = pl.pallas_call(
        kernel,
        out_shape=(jax.ShapeDtypeStruct((n_nodes, 1, mem_dim), jnp.float32),
                   jax.ShapeDtypeStruct((n_nodes, 1, mem_dim), jnp.float32)),
        grid_spec=pltpu.PrefetchScalarGridSpec(
            num_scalar_prefetch=0,
            grid=(n_nodes,),
            in_specs=[
                pl.BlockSpec((1, 1, in_dim), lambda n: (n, 0, 0)),
                pl.BlockSpec((1, max_children, mem_dim), lambda n: (n, 0, 0)),
                pl.BlockSpec((1, max_children, mem_dim), lambda n: (n, 0, 0)),
                pl.BlockSpec((in_dim, 3 * mem_dim), const2d),    # wioux
                pl.BlockSpec((1, 3 * mem_dim), const2d),         # bioux
                pl.BlockSpec((mem_dim, 3 * mem_dim), const2d),   # wiouh
                pl.BlockSpec((1, 3 * mem_dim), const2d),         # biouh
                pl.BlockSpec((in_dim, mem_dim), const2d),        # wfx
                pl.BlockSpec((1, mem_dim), const2d),             # bfx
                pl.BlockSpec((mem_dim, mem_dim), const2d),       # wfh
                pl.BlockSpec((1, mem_dim), const2d),             # bfh
            ],
            out_specs=[
                pl.BlockSpec((1, 1, mem_dim), lambda n: (n, 0, 0)),
                pl.BlockSpec((1, 1, mem_dim), lambda n: (n, 0, 0)),
            ],
        ),
        compiler_params=pltpu.CompilerParams(
            dimension_semantics=("arbitrary",)),
    )(x, child_c, child_h,
      params['wioux'], params['bioux'], params['wiouh'], params['biouh'],
      params['wfx'], params['bfx'], params['wfh'], params['bfh'])
    return c[:, 0, :], h[:, 0, :]


childsum_lstm_cell_batch_jit = jax.jit(childsum_lstm_cell_batch)


def childsum_lstm_cell(inputs, child_c, child_h, params):
    """Drop-in equivalent of ChildSumLSTMCell.forward for a single node.

    inputs  : (1, in_dim)
    child_c : (n_children, mem_dim)
    child_h : (n_children, mem_dim)
    returns : (c, h) each (1, mem_dim)
    """
    c, h = childsum_lstm_cell_batch_jit(
        inputs[None, :, :], child_c[None, :, :], child_h[None, :, :], params)
    return c, h


# ----------------------------------------------------------------------------
# Pure-JAX reference (mirrors the PyTorch module) for a correctness check
# ----------------------------------------------------------------------------
def childsum_ref(x_row, cc, ch, p):
    mem_dim = p['wfh'].shape[0]
    ch_sum = jnp.sum(ch, axis=0, keepdims=True)
    iou = x_row @ p['wioux'] + p['bioux'] + ch_sum @ p['wiouh'] + p['biouh']
    i = jax.nn.sigmoid(iou[:, 0:mem_dim])
    o = jax.nn.sigmoid(iou[:, mem_dim:2 * mem_dim])
    u = jnp.tanh(iou[:, 2 * mem_dim:3 * mem_dim])
    f = jax.nn.sigmoid(ch @ p['wfh'] + p['bfh'] + (x_row @ p['wfx'] + p['bfx']))
    fc = f * cc
    c = i * u + jnp.sum(fc, axis=0, keepdims=True)
    h = o * jnp.tanh(c)
    return c, h


def init_params(key, in_dim, mem_dim):
    ks = jax.random.split(key, 8)

    def lin(kw, kb, fan_in, fan_out):
        bound = fan_in ** -0.5
        w = jax.random.uniform(kw, (fan_in, fan_out), jnp.float32, -bound, bound)
        b = jax.random.uniform(kb, (1, fan_out), jnp.float32, -bound, bound)
        return w, b

    p = {}
    p['wioux'], p['bioux'] = lin(ks[0], ks[1], in_dim, 3 * mem_dim)
    p['wiouh'], p['biouh'] = lin(ks[2], ks[3], mem_dim, 3 * mem_dim)
    p['wfx'], p['bfx'] = lin(ks[4], ks[5], in_dim, mem_dim)
    p['wfh'], p['bfh'] = lin(ks[6], ks[7], mem_dim, mem_dim)
    return p


if __name__ == "__main__":
    IN_DIM = 32        # word_dim
    MEM_DIM = 32       # mem_dim (kept small for a fast run; kernel is generic)
    MAX_CHILDREN = 4
    N_NODES = 2
    CHILD_COUNTS = [3, 1]   # node 0 has 3 children, node 1 has 1 child

    key = jax.random.PRNGKey(0)
    k_par, k_x, k_c, k_h = jax.random.split(key, 4)
    params = init_params(k_par, IN_DIM, MEM_DIM)

    x = jax.random.normal(k_x, (N_NODES, 1, IN_DIM), jnp.float32)
    child_c_full = jax.random.normal(k_c, (N_NODES, MAX_CHILDREN, MEM_DIM), jnp.float32)
    child_h_full = jax.random.normal(k_h, (N_NODES, MAX_CHILDREN, MEM_DIM), jnp.float32)

    # Zero out the unused (padded) child slots -> exact ChildSum semantics.
    slot = jnp.arange(MAX_CHILDREN)[None, :, None]                      # (1, C, 1)
    counts = jnp.asarray(CHILD_COUNTS, jnp.int32)[:, None, None]        # (N, 1, 1)
    mask = (slot < counts).astype(jnp.float32)
    child_c = child_c_full * mask
    child_h = child_h_full * mask

    c, h = childsum_lstm_cell_batch_jit(x, child_c, child_h, params)
    (c, h) = jax.block_until_ready((c, h))

    assert c.shape == (N_NODES, MEM_DIM) and h.shape == (N_NODES, MEM_DIM)
    assert bool(jnp.all(jnp.isfinite(c))) and bool(jnp.all(jnp.isfinite(h)))

    # Check against the pure-JAX reference using the true (unpadded) child lists.
    for n, n_child in enumerate(CHILD_COUNTS):
        c_ref, h_ref = childsum_ref(x[n], child_c[n, :n_child, :],
                                    child_h[n, :n_child, :], params)
        assert bool(jnp.allclose(c[n:n + 1], c_ref, rtol=1e-4, atol=1e-4)), n
        assert bool(jnp.allclose(h[n:n + 1], h_ref, rtol=1e-4, atol=1e-4)), n

    # Single-node API (matches ChildSumLSTMCell.forward signature).
    c0, h0 = childsum_lstm_cell(x[0], child_c[0, :3, :], child_h[0, :3, :], params)
    jax.block_until_ready((c0, h0))
    assert c0.shape == (1, MEM_DIM) and h0.shape == (1, MEM_DIM)

    print("KERNEL_OK")
</pallas_src>

<mosaic_0001>
module attributes {stable_mosaic.version = 11 : i64} {
  func.func @_childsum_cell_kernel(%arg0: i32, %arg1: memref<1x1x32xf32, #tpu.memory_space<vmem>>, %arg2: memref<1x4x32xf32, #tpu.memory_space<vmem>>, %arg3: memref<1x4x32xf32, #tpu.memory_space<vmem>>, %arg4: memref<32x96xf32, #tpu.memory_space<vmem>>, %arg5: memref<1x96xf32, #tpu.memory_space<vmem>>, %arg6: memref<32x96xf32, #tpu.memory_space<vmem>>, %arg7: memref<1x96xf32, #tpu.memory_space<vmem>>, %arg8: memref<32x32xf32, #tpu.memory_space<vmem>>, %arg9: memref<1x32xf32, #tpu.memory_space<vmem>>, %arg10: memref<32x32xf32, #tpu.memory_space<vmem>>, %arg11: memref<1x32xf32, #tpu.memory_space<vmem>>, %arg12: memref<1x1x32xf32, #tpu.memory_space<vmem>>, %arg13: memref<1x1x32xf32, #tpu.memory_space<vmem>>) attributes {dimension_semantics = [#tpu.dimension_semantics<arbitrary>], iteration_bounds = array<i64: 2>, scalar_prefetch = 0 : i64, scratch_operands = 0 : i64, tpu.core_type = #tpu.core_type<tc>, window_params = [{transform_indices = @transform_0, window_bounds = array<i64: 1, 1, 32>}, {transform_indices = @transform_1, window_bounds = array<i64: 1, 4, 32>}, {transform_indices = @transform_2, window_bounds = array<i64: 1, 4, 32>}, {pipeline_mode = #tpu.pipeline_mode<synchronous>, transform_indices = @transform_3, window_bounds = array<i64: 32, 96>}, {pipeline_mode = #tpu.pipeline_mode<synchronous>, transform_indices = @transform_4, window_bounds = array<i64: 1, 96>}, {pipeline_mode = #tpu.pipeline_mode<synchronous>, transform_indices = @transform_5, window_bounds = array<i64: 32, 96>}, {pipeline_mode = #tpu.pipeline_mode<synchronous>, transform_indices = @transform_6, window_bounds = array<i64: 1, 96>}, {pipeline_mode = #tpu.pipeline_mode<synchronous>, transform_indices = @transform_7, window_bounds = array<i64: 32, 32>}, {pipeline_mode = #tpu.pipeline_mode<synchronous>, transform_indices = @transform_8, window_bounds = array<i64: 1, 32>}, {pipeline_mode = #tpu.pipeline_mode<synchronous>, transform_indices = @transform_9, window_bounds = array<i64: 32, 32>}, {pipeline_mode = #tpu.pipeline_mode<synchronous>, transform_indices = @transform_10, window_bounds = array<i64: 1, 32>}, {transform_indices = @transform_11, window_bounds = array<i64: 1, 1, 32>}, {transform_indices = @transform_12, window_bounds = array<i64: 1, 1, 32>}]} {
    %c0 = arith.constant 0 : index
    %c0_0 = arith.constant 0 : index
    %c0_1 = arith.constant 0 : index
    %0 = vector.load %arg1[%c0, %c0_0, %c0_1] : memref<1x1x32xf32, #tpu.memory_space<vmem>>, vector<1x1x32xf32>
    %1 = vector.shape_cast %0 : vector<1x1x32xf32> to vector<1x32xf32>
    %c0_2 = arith.constant 0 : index
    %c0_3 = arith.constant 0 : index
    %c0_4 = arith.constant 0 : index
    %2 = vector.load %arg2[%c0_2, %c0_3, %c0_4] : memref<1x4x32xf32, #tpu.memory_space<vmem>>, vector<1x4x32xf32>
    %3 = vector.shape_cast %2 : vector<1x4x32xf32> to vector<4x32xf32>
    %c0_5 = arith.constant 0 : index
    %c0_6 = arith.constant 0 : index
    %c0_7 = arith.constant 0 : index
    %4 = vector.load %arg3[%c0_5, %c0_6, %c0_7] : memref<1x4x32xf32, #tpu.memory_space<vmem>>, vector<1x4x32xf32>
    %5 = vector.shape_cast %4 : vector<1x4x32xf32> to vector<4x32xf32>
    %cst = arith.constant dense<0.000000e+00> : vector<32xf32>
    %6 = vector.multi_reduction <add>, %5, %cst [0] : vector<4x32xf32> to vector<32xf32>
    %7 = vector.shape_cast %6 : vector<32xf32> to vector<1x32xf32>
    %c0_8 = arith.constant 0 : index
    %c0_9 = arith.constant 0 : index
    %8 = vector.load %arg4[%c0_8, %c0_9] : memref<32x96xf32, #tpu.memory_space<vmem>>, vector<32x96xf32>
    %cst_10 = arith.constant dense<0.000000e+00> : vector<1x96xf32>
    %9 = tpu.matmul %1, %8, %cst_10 {dimension_numbers = #tpu.dot_dimension_numbers<[1], [0], [0], [1], [0, 0, 1, 1], [], []>} : vector<1x32xf32>, vector<32x96xf32>, vector<1x96xf32> -> vector<1x96xf32>
    %c0_11 = arith.constant 0 : index
    %c0_12 = arith.constant 0 : index
    %10 = vector.load %arg5[%c0_11, %c0_12] : memref<1x96xf32, #tpu.memory_space<vmem>>, vector<1x96xf32>
    %11 = arith.addf %9, %10 : vector<1x96xf32>
    %c0_13 = arith.constant 0 : index
    %c0_14 = arith.constant 0 : index
    %12 = vector.load %arg6[%c0_13, %c0_14] : memref<32x96xf32, #tpu.memory_space<vmem>>, vector<32x96xf32>
    %cst_15 = arith.constant dense<0.000000e+00> : vector<1x96xf32>
    %13 = tpu.matmul %7, %12, %cst_15 {dimension_numbers = #tpu.dot_dimension_numbers<[1], [0], [0], [1], [0, 0, 1, 1], [], []>} : vector<1x32xf32>, vector<32x96xf32>, vector<1x96xf32> -> vector<1x96xf32>
    %14 = arith.addf %11, %13 : vector<1x96xf32>
    %c0_16 = arith.constant 0 : index
    %c0_17 = arith.constant 0 : index
    %15 = vector.load %arg7[%c0_16, %c0_17] : memref<1x96xf32, #tpu.memory_space<vmem>>, vector<1x96xf32>
    %16 = arith.addf %14, %15 : vector<1x96xf32>
    %17 = vector.extract_strided_slice %16 {offsets = [0, 0], sizes = [1, 32], strides = [1, 1]} : vector<1x96xf32> to vector<1x32xf32>
    %18 = arith.negf %17 : vector<1x32xf32>
    %19 = math.exp %18 : vector<1x32xf32>
    %cst_18 = arith.constant 1.000000e+00 : f32
    %20 = vector.broadcast %cst_18 : f32 to vector<1x32xf32>
    %21 = arith.addf %20, %19 : vector<1x32xf32>
    %22 = arith.divf %20, %21 : vector<1x32xf32>
    %23 = vector.extract_strided_slice %16 {offsets = [0, 32], sizes = [1, 32], strides = [1, 1]} : vector<1x96xf32> to vector<1x32xf32>
    %24 = arith.negf %23 : vector<1x32xf32>
    %25 = math.exp %24 : vector<1x32xf32>
    %cst_19 = arith.constant 1.000000e+00 : f32
    %26 = vector.broadcast %cst_19 : f32 to vector<1x32xf32>
    %27 = arith.addf %26, %25 : vector<1x32xf32>
    %28 = arith.divf %26, %27 : vector<1x32xf32>
    %29 = vector.extract_strided_slice %16 {offsets = [0, 64], sizes = [1, 32], strides = [1, 1]} : vector<1x96xf32> to vector<1x32xf32>
    %30 = math.tanh %29 : vector<1x32xf32>
    %c0_20 = arith.constant 0 : index
    %c0_21 = arith.constant 0 : index
    %31 = vector.load %arg8[%c0_20, %c0_21] : memref<32x32xf32, #tpu.memory_space<vmem>>, vector<32x32xf32>
    %cst_22 = arith.constant dense<0.000000e+00> : vector<1x32xf32>
    %32 = tpu.matmul %1, %31, %cst_22 {dimension_numbers = #tpu.dot_dimension_numbers<[1], [0], [0], [1], [0, 0, 1, 1], [], []>} : vector<1x32xf32>, vector<32x32xf32>, vector<1x32xf32> -> vector<1x32xf32>
    %c0_23 = arith.constant 0 : index
    %c0_24 = arith.constant 0 : index
    %33 = vector.load %arg9[%c0_23, %c0_24] : memref<1x32xf32, #tpu.memory_space<vmem>>, vector<1x32xf32>
    %34 = arith.addf %32, %33 : vector<1x32xf32>
    %c0_25 = arith.constant 0 : index
    %c0_26 = arith.constant 0 : index
    %35 = vector.load %arg10[%c0_25, %c0_26] : memref<32x32xf32, #tpu.memory_space<vmem>>, vector<32x32xf32>
    %cst_27 = arith.constant dense<0.000000e+00> : vector<4x32xf32>
    %36 = tpu.matmul %5, %35, %cst_27 {dimension_numbers = #tpu.dot_dimension_numbers<[1], [0], [0], [1], [0, 0, 1, 1], [], []>} : vector<4x32xf32>, vector<32x32xf32>, vector<4x32xf32> -> vector<4x32xf32>
    %c0_28 = arith.constant 0 : index
    %c0_29 = arith.constant 0 : index
    %37 = vector.load %arg11[%c0_28, %c0_29] : memref<1x32xf32, #tpu.memory_space<vmem>>, vector<1x32xf32>
    %38 = vector.broadcast %37 : vector<1x32xf32> to vector<4x32xf32>
    %39 = arith.addf %36, %38 : vector<4x32xf32>
    %40 = vector.broadcast %34 : vector<1x32xf32> to vector<4x32xf32>
    %41 = arith.addf %39, %40 : vector<4x32xf32>
    %42 = arith.negf %41 : vector<4x32xf32>
    %43 = math.exp %42 : vector<4x32xf32>
    %cst_30 = arith.constant 1.000000e+00 : f32
    %44 = vector.broadcast %cst_30 : f32 to vector<4x32xf32>
    %45 = arith.addf %44, %43 : vector<4x32xf32>
    %46 = arith.divf %44, %45 : vector<4x32xf32>
    %47 = arith.mulf %46, %3 : vector<4x32xf32>
    %48 = arith.mulf %22, %30 : vector<1x32xf32>
    %cst_31 = arith.constant dense<0.000000e+00> : vector<32xf32>
    %49 = vector.multi_reduction <add>, %47, %cst_31 [0] : vector<4x32xf32> to vector<32xf32>
    %50 = vector.shape_cast %49 : vector<32xf32> to vector<1x32xf32>
    %51 = arith.addf %48, %50 : vector<1x32xf32>
    %52 = math.tanh %51 : vector<1x32xf32>
    %53 = arith.mulf %28, %52 : vector<1x32xf32>
    %c0_32 = arith.constant 0 : index
    %c0_33 = arith.constant 0 : index
    %c0_34 = arith.constant 0 : index
    %54 = vector.load %arg12[%c0_32, %c0_33, %c0_34] : memref<1x1x32xf32, #tpu.memory_space<vmem>>, vector<1x1x32xf32>
    %55 = vector.shape_cast %54 : vector<1x1x32xf32> to vector<1x32xf32>
    %56 = vector.shape_cast %51 : vector<1x32xf32> to vector<1x1x32xf32>
    tpu.vector_store %arg12[%c0_32, %c0_33, %c0_34], %56 {strides = array<i32>} : memref<1x1x32xf32, #tpu.memory_space<vmem>>, vector<1x1x32xf32>,
    %c0_35 = arith.constant 0 : index
    %c0_36 = arith.constant 0 : index
    %c0_37 = arith.constant 0 : index
    %57 = vector.load %arg13[%c0_35, %c0_36, %c0_37] : memref<1x1x32xf32, #tpu.memory_space<vmem>>, vector<1x1x32xf32>
    %58 = vector.shape_cast %57 : vector<1x1x32xf32> to vector<1x32xf32>
    %59 = vector.shape_cast %53 : vector<1x32xf32> to vector<1x1x32xf32>
    tpu.vector_store %arg13[%c0_35, %c0_36, %c0_37], %59 {strides = array<i32>} : memref<1x1x32xf32, #tpu.memory_space<vmem>>, vector<1x1x32xf32>,
    return
  }
  func.func @transform_0(%arg0: i32) -> (i32, i32, i32) {
    %c0_i32 = arith.constant 0 : i32
    %c0_i32_0 = arith.constant 0 : i32
    %c0_i32_1 = arith.constant 0 : i32
    return %arg0, %c0_i32, %c0_i32_0 : i32, i32, i32
  }
  func.func @transform_1(%arg0: i32) -> (i32, i32, i32) {
    %c0_i32 = arith.constant 0 : i32
    %c0_i32_0 = arith.constant 0 : i32
    %c0_i32_1 = arith.constant 0 : i32
    return %arg0, %c0_i32, %c0_i32_0 : i32, i32, i32
  }
  func.func @transform_2(%arg0: i32) -> (i32, i32, i32) {
    %c0_i32 = arith.constant 0 : i32
    %c0_i32_0 = arith.constant 0 : i32
    %c0_i32_1 = arith.constant 0 : i32
    return %arg0, %c0_i32, %c0_i32_0 : i32, i32, i32
  }
  func.func @transform_3(%arg0: i32) -> (i32, i32) {
    %c0_i32 = arith.constant 0 : i32
    %c0_i32_0 = arith.constant 0 : i32
    %c0_i32_1 = arith.constant 0 : i32
    return %c0_i32, %c0_i32_0 : i32, i32
  }
  func.func @transform_4(%arg0: i32) -> (i32, i32) {
    %c0_i32 = arith.constant 0 : i32
    %c0_i32_0 = arith.constant 0 : i32
    %c0_i32_1 = arith.constant 0 : i32
    return %c0_i32, %c0_i32_0 : i32, i32
  }
  func.func @transform_5(%arg0: i32) -> (i32, i32) {
    %c0_i32 = arith.constant 0 : i32
    %c0_i32_0 = arith.constant 0 : i32
    %c0_i32_1 = arith.constant 0 : i32
    return %c0_i32, %c0_i32_0 : i32, i32
  }
  func.func @transform_6(%arg0: i32) -> (i32, i32) {
    %c0_i32 = arith.constant 0 : i32
    %c0_i32_0 = arith.constant 0 : i32
    %c0_i32_1 = arith.constant 0 : i32
    return %c0_i32, %c0_i32_0 : i32, i32
  }
  func.func @transform_7(%arg0: i32) -> (i32, i32) {
    %c0_i32 = arith.constant 0 : i32
    %c0_i32_0 = arith.constant 0 : i32
    %c0_i32_1 = arith.constant 0 : i32
    return %c0_i32, %c0_i32_0 : i32, i32
  }
  func.func @transform_8(%arg0: i32) -> (i32, i32) {
    %c0_i32 = arith.constant 0 : i32
    %c0_i32_0 = arith.constant 0 : i32
    %c0_i32_1 = arith.constant 0 : i32
    return %c0_i32, %c0_i32_0 : i32, i32
  }
  func.func @transform_9(%arg0: i32) -> (i32, i32) {
    %c0_i32 = arith.constant 0 : i32
    %c0_i32_0 = arith.constant 0 : i32
    %c0_i32_1 = arith.constant 0 : i32
    return %c0_i32, %c0_i32_0 : i32, i32
  }
  func.func @transform_10(%arg0: i32) -> (i32, i32) {
    %c0_i32 = arith.constant 0 : i32
    %c0_i32_0 = arith.constant 0 : i32
    %c0_i32_1 = arith.constant 0 : i32
    return %c0_i32, %c0_i32_0 : i32, i32
  }
  func.func @transform_11(%arg0: i32) -> (i32, i32, i32) {
    %c0_i32 = arith.constant 0 : i32
    %c0_i32_0 = arith.constant 0 : i32
    %c0_i32_1 = arith.constant 0 : i32
    return %arg0, %c0_i32, %c0_i32_0 : i32, i32, i32
  }
  func.func @transform_12(%arg0: i32) -> (i32, i32, i32) {
    %c0_i32 = arith.constant 0 : i32
    %c0_i32_0 = arith.constant 0 : i32
    %c0_i32_1 = arith.constant 0 : i32
    return %arg0, %c0_i32, %c0_i32_0 : i32, i32, i32
  }
}

</mosaic_0001>

<bundles_post_ra>
// kernel: childsum_lstm_cell_batch.1
= control target key start
LH: loop header
LB: loop body
LE: loop exit
PB: predicated region body
PF: predicated region fallthrough
CT: control target
= control target key end

     0   :  { %s2117_s0 = inlined_call_operand.hbm [shape: f32[2,1,32], index: 0, kind: input, shape index: {}]   ;;  %s2118_s1 = inlined_call_operand.hbm [shape: f32[2,4,32], index: 1, kind: input, shape index: {}]   ;;  %s2119_s2 = inlined_call_operand.hbm [shape: f32[2,4,32], index: 2, kind: input, shape index: {}]   ;;  %s2120_s3 = inlined_call_operand.vmem [shape: f32[32,96], index: 3, kind: input, shape index: {}]   ;;  %s2121_s4 = inlined_call_operand.vmem [shape: f32[1,96], index: 4, kind: input, shape index: {}]   ;;  %s2122_s5 = inlined_call_operand.hbm [shape: f32[32,96], index: 5, kind: input, shape index: {}]   ;;  %s2123_s6 = inlined_call_operand.vmem [shape: f32[1,96], index: 6, kind: input, shape index: {}]   ;;  %s2124_s7 = inlined_call_operand.hbm [shape: f32[32,32], index: 7, kind: input, shape index: {}]   ;;  %s2125_s8 = inlined_call_operand.vmem [shape: f32[1,32], index: 8, kind: input, shape index: {}]   ;;  %s2126_s9 = inlined_call_operand.hbm [shape: f32[32,32], index: 9, kind: input, shape index: {}]   ;;  %s2127_s10 = inlined_call_operand.vmem [shape: f32[1,32], index: 10, kind: input, shape index: {}]   ;;  %s2128_s11 = inlined_call_operand.hbm [shape: f32[2,1,32], index: 11, kind: output, shape index: {0}]   ;;  %s2129_s12 = inlined_call_operand.hbm [shape: f32[2,1,32], index: 12, kind: output, shape index: {1}]  }
   0x1   :  { %2157 = sst [smem:[#allocation28_spill]] %s2118_s1 }
   0x2   :  { %2158 = sst [smem:[#allocation29_spill]] %s2121_s4 }
   0x3   :  { %2159 = sst [smem:[#allocation30_spill]] %s2122_s5 }
   0x4   :  { %2160 = sst [smem:[#allocation31_spill]] %s2123_s6 }
   0x5   :  { %2161 = sst [smem:[#allocation32_spill]] %s2125_s8 }
   0x6   :  { %2162 = sst [smem:[#allocation33_spill]] %s2127_s10 }
   0x7   :  { %2163 = sst [smem:[#allocation34_spill]] %s2128_s11 }
   0x8   :  { %2164 = sst [smem:[#allocation35_spill]] %s2129_s12 }
   0x9   :  { %18 = vsyncpa [#allocation3], 0 }
   0xa   :  { %20 = vsyncpa [#allocation3 + $0x1], 0 }
   0xb   :  { %21 = vsyncpa [#allocation6], 0 }
   0xc   :  { %23 = vsyncpa [#allocation6 + $0x1], 0 }
   0xd   :  { %24 = vsyncpa [#allocation9], 0 }
   0xe   :  { %25 = vsyncpa [#allocation12], 0 }
   0xf   :  { %26 = vsyncpa [#allocation4], 0 }
  0x10   :  { %28 = vsyncpa [#allocation4 + $0x1], 0 }
  0x11   :  { %29 = vsyncpa [#allocation15], 0 }
  0x12   :  { %31 = vsyncpa [#allocation15 + $0x1], 0  ;;  %s1712_s21 = smov 0   ;;  %s1714_s22 = smov 0  }
  0x13   :  { %s1716_s23 = smov 0   ;;  %s1718_s24 = smov 0  }
  0x14 LB: > { %2165 = sst [smem:[#allocation22_spill]] %s1617_s21  ;;  %s1733_s25 = sadd.s32 4294967295, %s1629_s24   ;;  %s1629_s24 = sphi %s1718_s24, %s2209_s24   ;;  %s1625_s23 = sphi %s1716_s23, %s2211_s23   ;;  %s1621_s22 = sphi %s1714_s22, %s2213_s22   ;;  %s1617_s21 = sphi %s1712_s21, %s2212_s21  }
  0x15   : > { %2166 = sst [smem:[#allocation23_spill]] %s1625_s23  ;;  %s1117_s26 = sadd.s32 4294967294, %s1629_s24  }
  0x16   : > { %p57_p0 = scmp.ne.s32.totalorder %s1621_s22, %s1617_s21  ;;  %p2133_p1 = scmp.eq.s32.totalorder %s1733_s25, 0 }
  0x17   : > { %p307_p3 = scmp.eq.s32.totalorder %s1117_s26, 1  ;;  %p1118_p5 = scmp.ge.s32.totalorder %s1629_s24, 1 }
  0x18   : > { %p1742_p4 = por %p2133_p1, %p57_p0  ;;  %p340_p7 = scmp.lt.s32.totalorder %s1629_s24, 3 }
  0x19   : > { %p1747_p6 = por %p307_p3, %p57_p0  ;;  %s1631_s30 = smov [#allocation8]  }
  0x1a   : > { %s2167_s27 = scalar_select %p1742_p4, 1, 0 }
  0x1b   : > { %s2168_s28 = scalar_select %p1747_p6, 1, 0 }
  0x1c   : > { %p1752_p8 = pnand %p1118_p5, %p340_p7  ;;  %s358_s13 = sshll.u32 %s1631_s30, 4  ;;  %s1756_s13 = int_to_ptr.vmem [resolvable:$true] %s358_s13 }
  0x1d   : > { %2169 = sst [smem:[#allocation24_spill]] %s2168_s28  ;;  %s1768_s15 = sadd.s32 1, %s1629_s24  }
  0x1e   : > { %s2170_s29 = scalar_select %p1752_p8, 1, 0 }
  0x1f   : > { %p1255_p9 = pneg %p1752_p8  ;;  %2172 = sst [smem:[#allocation25_spill]] %s1768_s15 }
  0x20   : > { %s44_s16 = sadd.s32 1, %s1625_s23  ;;  %s41_s17 = ssub.s32 %s1629_s24, %s1768_s15 }
  0x21   : > { %p1763_p11 = pnand %p1255_p9, %p2133_p1  ;;  %s2173_s5 = sld [smem:[#allocation30_spill]] }
  0x23   : > { %s2171_s14 = scalar_select %p1763_p11, 1, 0 }
  0x24   : > { %p1781_p13 = pneg %p1763_p11 }
  0x26   : > { %s2174_s28 = scalar_select %p1781_p13, 1, 0 }
  0x27   : > { %s1345_s20 = scalar_lea.hbm %s2173_s5, 512 }
  0x28   : > { %p1346_p12 = scmp.ne.s32.totalorder %s2173_s5, %s1345_s20  ;;  %p1352_p5 = scmp.lt.u32.totalorder %s1345_s20, %s2173_s5 }
  0x2a   : > { %p1348_p0 = pnand %p1781_p13, %p1346_p12 }
  0x2c   : > { %p1349_p3 = pneg %p1348_p0 }
  0x2e   : > { %p1354_p7 = pnand %p1352_p5, %p1349_p3 }
  0x30   : > { %1357 = shalt.err (!%p1354_p7)
}
  0x31   : > { %s1358_s18 = scalar_lea.vmem %s1756_s13, 512  ;;  %p1366_p2 = scmp.lt.s32.totalorder %s1756_s13, %s1756_s13 }
  0x32   : > { %p1359_p9 = scmp.ne.s32.totalorder %s1756_s13, %s1358_s18  ;;  %p1367_p6 = scmp.lt.s32.totalorder %s1358_s18, %s1358_s18 }
  0x34   : > { %p1361_p10 = pnand %p1359_p9, %p1781_p13  ;;  %p1368_p12 = por %p1367_p6, %p1366_p2 }
  0x36   : > { %p1362_p1 = pneg %p1361_p10 }
  0x38   : > { %p1369_p0 = pnand %p1368_p12, %p1362_p1 }
  0x3a   : > { %1372 = shalt.err (!%p1369_p0)
}
  0x3b   : > { %s2136_s19 = smov 128   ;;  %s2138_s12 = smov 8  }
  0x3c   : > { %1258 = dma.hbm_to_vmem [thread:$0]  (!%p1763_p11), %s2173_s5, 512, %s1756_s13, [#allocation9], %s2136_s19, %s2136_s19, %s2138_s12  }
  0x3d   : > { %p42_p1 = scmp.eq.s32.totalorder %s41_s17, 0  ;;  %p51_p2 = scmp.ne.s32.totalorder %s1625_s23, %s1621_s22 }
  0x3e   : > { %p52_p6 = scmp.eq.s32.totalorder %s1629_s24, 0  ;;  %p1285_p10 = scmp.lt.s32.totalorder %s1629_s24, 2 }
  0x3f   : > { %s1810_s26 = scalar_select %p42_p1, %s1625_s23, %s44_s16  }
  0x40   : > { %p53_p3 = por %p52_p6, %p51_p2  ;;  %p2176_p5 = scmp.eq.s32.totalorder %s1733_s25, 1 }
  0x41   : > { %2175 = sst [smem:[#allocation26_spill]] %s1810_s26  ;;  %s1819_s18 = sand.u32 1, %s1625_s23  }
  0x42   : > { %p1814_p7 = por %p2176_p5, %p51_p2  ;;  %s424_s15 = sand.u32 1, %s1629_s24  }
  0x43   : > { %p1822_p9 = pnand %p1285_p10, %p53_p3  ;;  %s2142_s13 = sshll.u32 %s1819_s18, 2 }
  0x44   : > { %s2177_s30 = scalar_select %p1814_p7, 1, 0 }
  0x45   : > { %s2179_s21 = scalar_select %p1822_p9, 1, 0 }
  0x46   : > { %2178 = sst [smem:[#allocation27_spill]] %s2177_s30  ;;  %s2143_s17 = sshll.u32 %s1629_s24, 6 }
  0x47   : > { %s2180_s1 = sld [smem:[#allocation28_spill]]  ;;  %s428_s12 = scalar_lea.vmem [#allocation5], %s2142_s13 }
  0x48   : > { %s435_s5 = sshll.u32 %s428_s12, 4  ;;  %s1839_s26 = scalar_lea.sflag [#allocation6], %s424_s15  ;;  %s1837_s5 = int_to_ptr.vmem [resolvable:$true] %s435_s5 }
  0x49   : > { %p1845_p0 = pneg %p1822_p9 }
  0x4b   : > { %s2181_s11 = scalar_select %p1845_p0, 1, 0 }
  0x4d   : > { %s1833_s19 = scalar_lea.hbm %s2180_s1, %s2143_s17  ;;  %s1378_s13 = scalar_lea.hbm %s2180_s1, 128 }
  0x4e   : > { %s1373_s23 = scalar_lea.hbm %s1833_s19, 64  ;;  %p1379_p6 = scmp.lt.u32.totalorder %s1833_s19, %s2180_s1 }
  0x4f   : > { %p1374_p12 = scmp.ne.s32.totalorder %s1833_s19, %s1373_s23  ;;  %p1380_p10 = scmp.lt.u32.totalorder %s1378_s13, %s1373_s23 }
  0x50   : > { %p1382_p5 = scmp.lt.u32.totalorder %s1373_s23, %s1833_s19 }
  0x51   : > { %p1376_p1 = pnand %p1845_p0, %p1374_p12  ;;  %p1381_p3 = por %p1380_p10, %p1379_p6 }
  0x53   : > { %p1377_p2 = pneg %p1376_p1  ;;  %p1383_p7 = por %p1382_p5, %p1381_p3 }
  0x55   : > { %p1384_p4 = pnand %p1383_p7, %p1377_p2 }
  0x57   : > { %1387 = shalt.err (!%p1384_p4)
}
  0x58   : > { %s1388_s15 = scalar_lea.vmem %s1837_s5, 64  ;;  %s1634_s16 = smov [#allocation5]  }
  0x59   : > { %p1389_p12 = scmp.ne.s32.totalorder %s1837_s5, %s1388_s15  ;;  %s1393_s20 = sshll.u32 %s1634_s16, 4  ;;  %s1394_s20 = int_to_ptr.vmem [resolvable:$false] %s1393_s20 }
  0x5a   : > { %s1395_s17 = scalar_lea.vmem %s1394_s20, 128  ;;  %p1396_p11 = scmp.lt.s32.totalorder %s1837_s5, %s1394_s20 }
  0x5b   : > { %p1391_p1 = pnand %p1389_p12, %p1845_p0  ;;  %p1397_p13 = scmp.lt.s32.totalorder %s1395_s17, %s1388_s15 }
  0x5d   : > { %p1392_p8 = pneg %p1391_p1  ;;  %p1398_p6 = por %p1397_p13, %p1396_p11 }
  0x5f   : > { %p1399_p10 = pnand %p1398_p6, %p1392_p8 }
  0x61   : > { %1402 = shalt.err (!%p1399_p10)
}
  0x62   : > { %1271 = dma.hbm_to_vmem [thread:$0]  (!%p1822_p9), %s1833_s19, 64, %s1837_s5, %s1839_s26  }
  0x63   : > { %s2182_s23 = sshll.u32 %s1629_s24, 6  ;;  %s1635_s1 = smov [#allocation10]  }
  0x64   : > { %s1874_s16 = scalar_lea.hbm %s2119_s2, %s2182_s23  ;;  %s374_s20 = sshll.u32 %s1635_s1, 4  ;;  %s375_s20 = int_to_ptr.vmem [resolvable:$true] %s374_s20 }
  0x65   : > { %s1636_s15 = smov [#allocation11]   ;;  %s1403_s8 = scalar_lea.hbm %s2124_s7, 512 }
  0x66   : > { %s390_s17 = sshll.u32 %s1636_s15, 4  ;;  %p1404_p4 = scmp.ne.s32.totalorder %s2124_s7, %s1403_s8  ;;  %s391_s17 = int_to_ptr.vmem [resolvable:$true] %s390_s17 }
  0x67   : > { %p2183_p8 = scmp.ne.s32.totalorder %s2174_s28, 0  ;;  %p1410_p7 = scmp.lt.u32.totalorder %s1403_s8, %s2124_s7 }
  0x69   : > { %p1406_p11 = pnand %p1404_p4, %p2183_p8 }
  0x6b   : > { %p1407_p13 = pneg %p1406_p11 }
  0x6d   : > { %p1412_p2 = pnand %p1410_p7, %p1407_p13 }
  0x6f   : > { %1415 = shalt.err (!%p1412_p2)
}
  0x70   : > { %s1416_s1 = scalar_lea.vmem %s375_s20, 512  ;;  %p1424_p1 = scmp.lt.s32.totalorder %s375_s20, %s375_s20 }
  0x71   : > { %p1417_p3 = scmp.ne.s32.totalorder %s375_s20, %s1416_s1  ;;  %p1425_p6 = scmp.lt.s32.totalorder %s1416_s1, %s1416_s1 }
  0x73   : > { %p1419_p5 = pnand %p1417_p3, %p2183_p8  ;;  %p1426_p10 = por %p1425_p6, %p1424_p1 }
  0x75   : > { %p1420_p12 = pneg %p1419_p5 }
  0x77   : > { %p1427_p9 = pnand %p1426_p10, %p1420_p12 }
  0x79   : > { %1430 = shalt.err (!%p1427_p9)
}
  0x7a   : > { %p2184_p4 = scmp.ne.s32.totalorder %s2171_s14, 0  ;;  %s2185_s4 = smov 8  }
  0x7b   : > { %s2186_s6 = smov 128   ;;  %s1431_s13 = scalar_lea.hbm %s2126_s9, 512 }
  0x7c   : > { %1261 = dma.hbm_to_vmem [thread:$0]  (!%p2184_p4), %s2124_s7, 512, %s375_s20, [#allocation9], %s2186_s6, %s2186_s6, %s2185_s4  }
  0x7d   : > { %p1432_p11 = scmp.ne.s32.totalorder %s2126_s9, %s1431_s13  ;;  %p1438_p7 = scmp.lt.u32.totalorder %s1431_s13, %s2126_s9 }
  0x7f   : > { %p1434_p9 = pnand %p1432_p11, %p2183_p8 }
  0x81   : > { %p1435_p13 = pneg %p1434_p9 }
  0x83   : > { %p1440_p2 = pnand %p1438_p7, %p1435_p13 }
  0x85   : > { %1443 = shalt.err (!%p1440_p2)
}
  0x86   : > { %s1444_s1 = scalar_lea.vmem %s391_s17, 512  ;;  %p1452_p1 = scmp.lt.s32.totalorder %s391_s17, %s391_s17 }
  0x87   : > { %p1445_p3 = scmp.ne.s32.totalorder %s391_s17, %s1444_s1  ;;  %p1453_p6 = scmp.lt.s32.totalorder %s1444_s1, %s1444_s1 }
  0x89   : > { %p1447_p5 = pnand %p1445_p3, %p2183_p8  ;;  %p1454_p10 = por %p1453_p6, %p1452_p1 }
  0x8b   : > { %p1448_p12 = pneg %p1447_p5 }
  0x8d   : > { %p1455_p0 = pnand %p1454_p10, %p1448_p12 }
  0x8f   : > { %1458 = shalt.err (!%p1455_p0)
}
  0x90   : > { %1264 = dma.hbm_to_vmem [thread:$0]  (!%p2184_p4), %s2126_s9, 512, %s391_s17, [#allocation12], %s2186_s6, %s2186_s6, %s2185_s4  }
  0x91   : > { %s1123_s28 = sshll.u32 %s1629_s24, 4  ;;  %s410_s14 = scalar_lea.vmem [#allocation2], %s1819_s18 }
  0x92   : > { %s1922_s23 = scalar_lea.hbm %s2117_s0, %s1123_s28  ;;  %s417_s13 = sshll.u32 %s410_s14, 4  ;;  %s1925_s13 = int_to_ptr.vmem [resolvable:$true] %s417_s13 }
  0x93   : > { %s2187_s12 = sshll.u32 %s1819_s18, 2  ;;  %s408_s17 = scalar_lea.sflag [#allocation3], %s1819_s18 }
  0x94   : > { %s1929_s15 = scalar_lea.vmem [#allocation7], %s2187_s12  ;;  %s1459_s4 = scalar_lea.hbm %s1922_s23, 16 }
  0x95   : > { %s453_s5 = sshll.u32 %s1929_s15, 4  ;;  %p1460_p0 = scmp.ne.s32.totalorder %s1922_s23, %s1459_s4  ;;  %s454_s5 = int_to_ptr.vmem [resolvable:$true] %s453_s5 }
  0x96   : > { %p2188_p8 = scmp.ne.s32.totalorder %s2181_s11, 0  ;;  %s1464_s1 = scalar_lea.hbm %s2117_s0, 32 }
  0x97   : > { %p1465_p9 = scmp.lt.u32.totalorder %s1922_s23, %s2117_s0  ;;  %p1466_p13 = scmp.lt.u32.totalorder %s1464_s1, %s1459_s4 }
  0x98   : > { %p1462_p4 = pnand %p1460_p0, %p2188_p8  ;;  %p1468_p2 = scmp.lt.u32.totalorder %s1459_s4, %s1922_s23 }
  0x99   : > { %p1467_p7 = por %p1466_p13, %p1465_p9 }
  0x9a   : > { %p1463_p11 = pneg %p1462_p4 }
  0x9b   : > { %p1469_p3 = por %p1468_p2, %p1467_p7 }
  0x9d   : > { %p1470_p5 = pnand %p1469_p3, %p1463_p11 }
  0x9f   : > { %1473 = shalt.err (!%p1470_p5)
}
  0xa0   : > { %s1474_s18 = scalar_lea.vmem %s1925_s13, 16  ;;  %s1637_s28 = smov [#allocation2]  }
  0xa1   : > { %p1475_p12 = scmp.ne.s32.totalorder %s1925_s13, %s1474_s18  ;;  %s1479_s8 = sshll.u32 %s1637_s28, 4  ;;  %s1480_s8 = int_to_ptr.vmem [resolvable:$false] %s1479_s8 }
  0xa2   : > { %s1481_s30 = scalar_lea.vmem %s1480_s8, 32  ;;  %p1482_p10 = scmp.lt.s32.totalorder %s1925_s13, %s1480_s8 }
  0xa3   : > { %p1477_p1 = pnand %p1475_p12, %p2188_p8  ;;  %p1483_p0 = scmp.lt.s32.totalorder %s1481_s30, %s1474_s18 }
  0xa5   : > { %p1478_p6 = pneg %p1477_p1  ;;  %p1484_p4 = por %p1483_p0, %p1482_p10 }
  0xa7   : > { %p1485_p9 = pnand %p1484_p4, %p1478_p6 }
  0xa9   : > { %1488 = shalt.err (!%p1485_p9)
}
  0xaa   : > { %p2189_p11 = scmp.ne.s32.totalorder %s2179_s21, 0  ;;  %s1489_s14 = scalar_lea.hbm %s1874_s16, 64 }
  0xab   : > { %p1490_p13 = scmp.ne.s32.totalorder %s1874_s16, %s1489_s14  ;;  %s1494_s6 = scalar_lea.hbm %s2119_s2, 128 }
  0xac   : > { %1268 = dma.hbm_to_vmem [thread:$0]  (!%p2189_p11), %s1922_s23, 16, %s1925_s13, %s408_s17  }
  0xad   : > { %p1492_p7 = pnand %p1490_p13, %p2188_p8  ;;  %p1495_p3 = scmp.lt.u32.totalorder %s1874_s16, %s2119_s2 }
  0xae   : > { %p1496_p5 = scmp.lt.u32.totalorder %s1494_s6, %s1489_s14  ;;  %p1498_p1 = scmp.lt.u32.totalorder %s1489_s14, %s1874_s16 }
  0xaf   : > { %p1493_p2 = pneg %p1492_p7 }
  0xb0   : > { %p1497_p12 = por %p1496_p5, %p1495_p3 }
  0xb2   : > { %p1499_p6 = por %p1498_p1, %p1497_p12 }
  0xb4   : > { %p1500_p10 = pnand %p1499_p6, %p1493_p2 }
  0xb6   : > { %1503 = shalt.err (!%p1500_p10)
}
  0xb7   : > { %s1504_s23 = scalar_lea.vmem %s454_s5, 64  ;;  %s1638_s13 = smov [#allocation7]  }
  0xb8   : > { %p1505_p0 = scmp.ne.s32.totalorder %s454_s5, %s1504_s23  ;;  %s1509_s15 = sshll.u32 %s1638_s13, 4  ;;  %s1510_s15 = int_to_ptr.vmem [resolvable:$false] %s1509_s15 }
  0xb9   : > { %s1511_s17 = scalar_lea.vmem %s1510_s15, 128  ;;  %p1512_p13 = scmp.lt.s32.totalorder %s454_s5, %s1510_s15 }
  0xba   : > { %p1507_p4 = pnand %p1505_p0, %p2188_p8  ;;  %p1513_p7 = scmp.lt.s32.totalorder %s1511_s17, %s1504_s23 }
  0xbc   : > { %p1508_p9 = pneg %p1507_p4  ;;  %p1514_p11 = por %p1513_p7, %p1512_p13 }
  0xbe   : > { %p1515_p3 = pnand %p1514_p11, %p1508_p9 }
  0xc0   : > { %1518 = shalt.err (!%p1515_p3)
}
  0xc1   : > { %p2190_p5 = scmp.ne.s32.totalorder %s2179_s21, 0  ;;  %p2191_p2 = scmp.ne.s32.totalorder %s2170_s29, 0 }
  0xc2   : > { %s1977_s11 = sand.u32 (!%p2191_p2), 1, %s1621_s22   ;;  %p2192_p8 = scmp.ne.s32.totalorder (!%p2191_p2), %s2167_s27, 0 }
  0xc3   : > { %1274 = dma.hbm_to_vmem [thread:$0]  (!%p2190_p5), %s1874_s16, 64, %s454_s5, %s1839_s26  }
  0xc4   : > { %462 = sbr.rel (%p2191_p2) target bundleno = 833 (0x341), region = 64  ;;  %s465_s20 = scalar_lea.sflag (!%p2191_p2), [#allocation3], %s1977_s11 }
  0xc5   : > { %s467_s10 = scalar_lea.vmem (!%p2191_p2), [#allocation2], %s1977_s11 }
  0xcb   : > { %1592 = dma.done.wait (%p2192_p8), %s465_s20, 16  }
  0xcc   : > { %1594 = vsyncadd (%p2192_p8), %s465_s20, 4294967280  ;;  %s472_s26 = sand.u32 1, %s1733_s25   ;;  %s1129_s21 = sshll.u32 %s1977_s11, 2 }
  0xcd   : > { %s473_s29 = scalar_lea.sflag [#allocation6], %s472_s26  ;;  %s1987_s16 = scalar_lea.vmem [#allocation5], %s1129_s21 }
  0xce   : > { %1596 = dma.done.wait (%p2192_p8), %s473_s29, 128  }
  0xcf   : > { %1598 = vsyncadd (%p2192_p8), %s473_s29, 4294967168  ;;  %s485_s5 = scalar_lea.vmem [#allocation7], %s1129_s21  ;;  %p2193_p11 = scmp.eq.s32.totalorder %s1733_s25, 0 }
  0xd1   : > { %1600 = dma.done.wait (%p2193_p11), [#allocation9], 1024   ;;  %p2194_p12 = pmov %p2193_p11 }
  0xd2   : > { %p2195_p1 = pmov %p2193_p11 }
  0xd3   : > { %1602 = vsyncadd (%p2194_p12), [#allocation9], 4294966272 }
  0xd4   : > { %1604 = dma.done.wait (%p2195_p1), [#allocation12], 512   ;;  %p2196_p6 = pmov %p2195_p1 }
  0xd5   : > { %v1639_v0 = vmov 0.0|0.0   ;;  %vm1640_vm0 = vmmov 0   ;;  %v1641_v1 = vmov 0.0   ;;  %v561_v2 = vld [vmem:[%s2120_s3] sm:$0xff]  ;;  %v562_v3 = vld [vmem:[%s2120_s3 + $0x8] sm:$0xff]  ;;  %v640_v4 = vld [vmem:[#allocation8] sm:$0xff]  ;;  %v886_v38 = vlaneseq }
  0xd6   : > { %1606 = vsyncadd (%p2196_p6), [#allocation12], 4294966784  ;;  %1209 = vmatprep.subr.bf16.mxu0 %v1639_v0  ;;  %1215 = vmatprep.subr.bf16.mxu1 %v1639_v0  ;;  %v1210_v5 = vpack.c.bf16 %v562_v3, %v561_v2  ;;  %v641_v6 = vld [vmem:[#allocation8 + $0x8] sm:$0xff]  ;;  %v563_v7 = vld [vmem:[%s2120_s3 + $0x10] sm:$0xff]  ;;  %vm553_vm1 = vcmask 257024   ;;  %vm566_vm2 = vcmask 261120  }
  0xd7   : > { %1173 = vmatprep.mubr.msk.f32.mxu0 %vm1640_vm0, %v1641_v1  ;;  %1184 = vmatprep.mubr.msk.f32.mxu1 %vm1640_vm0, %v1641_v1  ;;  %v564_v8 = vld [vmem:[%s2120_s3 + $0x18] sm:$0xff]  ;;  %v1216_v9 = vpack.c.bf16 %v641_v6, %v640_v4  ;;  %v642_v10 = vld [vmem:[#allocation8 + $0x10] sm:$0xff]  ;;  %v643_v11 = vld [vmem:[#allocation8 + $0x18] sm:$0xff]  ;;  %s2197_s1 = sld [smem:[#allocation29_spill]]  ;;  %v887_v40 = vshrl.u32 %v886_v38, 7  ;;  %s2198_s15 = sld [smem:[#allocation31_spill]] }
  0xd8   : > { %1211 = vmatpush3.bf16.msra.mxu0 %v1210_v5  ;;  %v1213_v12 = vpack.c.bf16 %v564_v8, %v563_v7  ;;  %v552_v13 = vld [vmem:[%s485_s5] sm:$0xf]  ;;  %v1219_v14 = vpack.c.bf16 %v643_v11, %v642_v10  ;;  %v727_v16 = vld [vmem:[#allocation10] sm:$0xff]  ;;  %v728_v17 = vld [vmem:[#allocation10 + $0x8] sm:$0xff]  ;;  %s2200_s29 = sld [smem:[#allocation33_spill]]  ;;  %s1642_s5 = smov 64  }
  0xd9   : > { %1212 = vmatprep.subr.bf16.mxu0 %v1639_v0  ;;  %1217 = vmatpush3.bf16.msra.mxu1 %v1216_v9  ;;  %v554_v15 = vsel %vm553_vm1, %v552_v13, 0.0  ;;  %v550_v19 = vld [vmem:[%s467_s10] sm:$0x1]  ;;  %v1222_v21 = vpack.c.bf16 %v728_v17, %v727_v16  ;;  %v729_v22 = vld [vmem:[#allocation10 + $0x10] sm:$0xff]  ;;  %v730_v23 = vld [vmem:[#allocation10 + $0x18] sm:$0xff]  ;;  %s2199_s10 = sld [smem:[#allocation32_spill]] }
  0xda   : > { %1218 = vmatprep.subr.bf16.mxu1 %v1639_v0  ;;  %v555_v18 = vrot.slane %v554_v15, 4  ;;  %v802_v26 = vld [vmem:[#allocation11] sm:$0xff]  ;;  %v803_v27 = vld [vmem:[#allocation11 + $0x8] sm:$0xff]  ;;  %v1225_v28 = vpack.c.bf16 %v730_v23, %v729_v22  ;;  %v804_v32 = vld [vmem:[#allocation11 + $0x10] sm:$0xff]  ;;  %v888_v50 = vsub.s32 0, %v887_v40  ;;  %vm917_vm3 = vcmask 253952  }
  0xdb   : > { %v1228_v30 = vpack.c.bf16 %v803_v27, %v802_v26  ;;  %v805_v33 = vld [vmem:[#allocation11 + $0x18] sm:$0xff]  ;;  %v551_v63 = vld [vmem:[%s1987_s16] sm:$0xf]  ;;  %s2201_s16 = sld [smem:[#allocation27_spill]]  ;;  %s543_s27 = scalar_lea.vmem [#allocation13], %s1977_s11 }
  0xdc   : > { %1214 = vmatpush3.bf16.msra.mxu0 %v1213_v12  ;;  %v556_v20 = vadd.f32 %v555_v18, %v554_v15  ;;  %v1231_v34 = vpack.c.bf16 %v805_v33, %v804_v32  ;;  %s1643_s18 = smov 32   ;;  %s1141_s28 = sshll.u32 %s1733_s25, 4 }
  0xdd   : > { %1220 = vmatpush3.bf16.msra.mxu1 %v1219_v14  ;;  %1221 = vmatprep.subr.bf16.mxu0 %v1639_v0  ;;  %v565_v36 = vld [vmem:[%s2197_s1] sm:$0x1]  ;;  %s941_s8 = sshll.u32 %s543_s27, 4  ;;  %s2202_s12 = sld [smem:[#allocation34_spill]]  ;;  %s942_s8 = int_to_ptr.vmem [resolvable:$true] %s941_s8 }
  0xde   : > { %v557_v24 = vrot.slane %v556_v20, 2  ;;  %1227 = vmatprep.subr.bf16.mxu1 %v1639_v0  ;;  %v718_v42 = vld [vmem:[%s2198_s15] sm:$0x1]  ;;  %s925_s6 = scalar_lea.sflag [#allocation4], %s1977_s11  ;;  %s1519_s19 = scalar_lea.vmem %s942_s8, 16 }
  0xdf   : > { %1174 = vmatmul.mubr.msk.f32.vlgmr.msra.gmra.mrb[0].mxu0 %vm566_vm2, %v550_v19  ;;  %v731_v43 = vld [vmem:[%s2199_s10] sm:$0x1]  ;;  %p1520_p10 = scmp.ne.s32.totalorder %s942_s8, %s1519_s19  ;;  %s1644_s1 = smov [#allocation13]  }
  0xe0   : > { %v558_v25 = vadd.f32 %v557_v24, %v556_v20  ;;  %1223 = vmatpush3.bf16.msra.mxu0 %v1222_v21  ;;  %1195 = vmatprep.mubr.msk.f32.mxu0 %vm1640_vm0, %v1641_v1  ;;  %v1138_v51 = vld [vmem:[%s2200_s29] ss:$0 sm:$0xff]  ;;  %s1523_s23 = sshll.u32 %s1644_s1, 4  ;;  %s1524_s23 = int_to_ptr.vmem [resolvable:$false] %s1523_s23 }
  0xe1   : > { %1224 = vmatprep.subr.bf16.mxu0 %v1639_v0  ;;  %p2203_p0 = scmp.ne.s32.totalorder %s2201_s16, 0  ;;  %s1525_s13 = scalar_lea.vmem %s1524_s23, 32 }
  0xe2   : > { %v559_v29 = vrot.slane %v558_v25, 1  ;;  %p1526_p13 = scmp.lt.s32.totalorder %s942_s8, %s1524_s23  ;;  %p1527_p7 = scmp.lt.s32.totalorder %s1525_s13, %s1519_s19 }
  0xe3   : > { %s2046_s4 = scalar_lea.hbm %s2202_s12, %s1141_s28  ;;  %p1521_p4 = pnand %p1520_p10, %p2203_p0 }
  0xe4   : > { %v560_v31 = vadd.f32 %v559_v29, %v558_v25  ;;  %1226 = vmatpush3.bf16.msra.mxu0 %v1225_v28  ;;  %p1528_p3 = por %p1527_p7, %p1526_p13 }
  0xe5   : > { %p1522_p9 = pneg %p1521_p4 }
  0xe6   : > { %1185 = vmatmul.mubr.msk.f32.vlgmr.msra.gmra.mrb[0].mxu1 %vm566_vm2, %v560_v31 }
  0xe7   : > { %1229 = vmatpush3.bf16.msra.mxu1 %v1228_v30  ;;  %1196 = vmatmul.mubr.msk.f32.vlgmr.msra.gmra.mrb[2].mxu0 %vm566_vm2, %v550_v19  ;;  %p1529_p5 = pnand %p1528_p3, %p1522_p9 }
  0xe8   : > { %1230 = vmatprep.subr.bf16.mxu1 %v1639_v0  ;;  %1206 = vmatprep.mubr.msk.f32.mxu1 %vm1640_vm0, %v1641_v1 }
  0xeb   : > { %1232 = vmatpush3.bf16.msra.mxu1 %v1231_v34 }
  0xee   : > { %1207 = vmatmul.mubr.msk.f32.vlgmr.msra.gmra.mrb[2].mxu1 %vm566_vm2, %v552_v13 }
 0x1b2   : > { %v636_v35 = vpop.f32.mrb[0].mxu0 }
 0x1b3   : > { %v1175_v37 = vpop.f32.mrb[1].mxu0  ;;  %v637_v39 = vadd.f32 %v636_v35, %v565_v36 }
 0x1b9   : > { %v713_v41 = vpop.f32.mrb[0].mxu1 }
 0x1ba   : > { %v717_v44 = vadd.f32 %v713_v41, %v637_v39  ;;  %v1186_v45 = vpop.f32.mrb[1].mxu1  ;;  %v798_v46 = vpop.f32.mrb[2].mxu0 }
 0x1bb   : > { %v1197_v47 = vpop.f32.mrb[3].mxu0  ;;  %v799_v49 = vadd.f32 %v798_v46, %v731_v43 }
 0x1bc   : > { %v719_v48 = vadd.f32 %v718_v42, %v717_v44 }
 0x1bd   : > { %v889_v52 = vrot.slane %v799_v49, %v888_v50 }
 0x1be   : > { %1333 = vtanh.f32 %v719_v48  ;;  %v1136_v61 = vmul.f32 -1.442695, %v719_v48 }
 0x1c1   : > { %v882_v53 = vpop.f32.mrb[2].mxu1 }
 0x1c2   : > { %v883_v54 = vadd.f32 %v1138_v51, %v882_v53  ;;  %v1208_v55 = vpop.f32.mrb[3].mxu1 }
 0x1c4   : > { %v890_v56 = vadd.f32 %v889_v52, %v883_v54 }
 0x1c6   : > { %v1140_v58 = vmul.f32 -1.442695, %v890_v56 }
 0x1c8   : > { %v1334_v57 = vpop.eup %1333  ;;  %1335 = vpow2.f32 %v1140_v58 }
 0x1c9   : > { %899 = vrot.lane.b32.xlu0 %v1334_v57, %s1642_s5 }
 0x1d2   : > { %v1336_v59 = vpop.eup %1335 }
 0x1d3   : > { %v894_v60 = vadd.f32 1.0, %v1336_v59 }
 0x1d5   : > { %1337 = vrcp.f32 %v894_v60 }
 0x1d6   : > { %1339 = vpow2.f32 %v1136_v61 }
 0x1df   : > { %v1338_v62 = vpop.eup %1337 }
 0x1e0   : > { %v897_v0 = vmul.f32 %v1338_v62, %v551_v63  ;;  %v1340_v3 = vpop.eup %1339 }
 0x1e1   : > { %v723_v5 = vadd.f32 1.0, %v1340_v3 }
 0x1e2   : > { %v903_v1 = vsel %vm553_vm1, %v897_v0, 0.0 }
 0x1e3   : > { %v904_v2 = vrot.slane %v903_v1, 4  ;;  %1341 = vrcp.f32 %v723_v5 }
 0x1e5   : > { %v905_v4 = vadd.f32 %v904_v2, %v903_v1 }
 0x1e7   : > { %v906_v6 = vrot.slane %v905_v4, 2 }
 0x1e9   : > { %v907_v7 = vadd.f32 %v906_v6, %v905_v4 }
 0x1eb   : > { %v908_v8 = vrot.slane %v907_v7, 1 }
 0x1ed   : > { %v1342_v9 = vpop.eup %1341  ;;  %v909_v12 = vadd.f32 %v908_v8, %v907_v7 }
 0x23b   : > { %v900_v10 = vpop.permute.xlu0 %899 }
 0x23c   : > { %v902_v11 = vmul.f32 %v1342_v9, %v900_v10 }
 0x23e   : > { %v910_v13 = vadd.f32 %v909_v12, %v902_v11 }
 0x240   : > { %1343 = vtanh.f32 %v910_v13  ;;  %918 = vst.msk [vmem:[%s543_s27] sm:$0x1] %vm917_vm3, %v910_v13 }
 0x24a   : > { %v1344_v14 = vpop.eup %1343 }
 0x24b   : > { %913 = vrot.lane.b32.xlu0 %v1344_v14, %s1643_s18 }
 0x24c   : > { %1532 = shalt.err (!%p1529_p5)
}
 0x24d   : > { %s1533_s15 = scalar_lea.hbm %s2046_s4, 16  ;;  %s1537_s10 = scalar_lea.hbm %s2202_s12, 32 }
 0x24e   : > { %p1534_p2 = scmp.ne.s32.totalorder %s2046_s4, %s1533_s15  ;;  %p1538_p12 = scmp.lt.u32.totalorder %s2046_s4, %s2202_s12 }
 0x24f   : > { %p1539_p1 = scmp.lt.u32.totalorder %s1537_s10, %s1533_s15  ;;  %p1541_p10 = scmp.lt.u32.totalorder %s1533_s15, %s2046_s4 }
 0x250   : > { %p1535_p8 = pnand %p1534_p2, %p2203_p0 }
 0x251   : > { %p1540_p6 = por %p1539_p1, %p1538_p12 }
 0x252   : > { %p1536_p11 = pneg %p1535_p8 }
 0x253   : > { %p1542_p4 = por %p1541_p10, %p1540_p6 }
 0x255   : > { %p1543_p9 = pnand %p1542_p4, %p1536_p11 }
 0x257   : > { %1546 = shalt.err (!%p1543_p9)
}
 0x258   : > { %1251 = dma.vmem_to_hbm [thread:$0]  (%p2203_p0), %s942_s8, 16, %s2046_s4, %s925_s6  }
 0x259   : > { %s1645_s29 = smov 96   ;;  %s549_s5 = scalar_lea.vmem [#allocation14], %s1977_s11 }
 0x25a   : > { %s954_s27 = sshll.u32 %s549_s5, 4  ;;  %s2204_s14 = sld [smem:[#allocation35_spill]]  ;;  %s2074_s27 = int_to_ptr.vmem [resolvable:$true] %s954_s27 }
 0x25b   : > { %s929_s8 = scalar_lea.sflag [#allocation15], %s1977_s11  ;;  %s1547_s4 = scalar_lea.vmem %s2074_s27, 16 }
 0x25c   : > { %p1548_p13 = scmp.ne.s32.totalorder %s2074_s27, %s1547_s4  ;;  %s1646_s25 = smov [#allocation14]  }
 0x25d   : > { %s1551_s6 = sshll.u32 %s1646_s25, 4  ;;  %s1552_s6 = int_to_ptr.vmem [resolvable:$false] %s1551_s6 }
 0x25e   : > { %p1549_p7 = pnand %p1548_p13, %p2203_p0  ;;  %s1553_s1 = scalar_lea.vmem %s1552_s6, 32 }
 0x25f   : > { %p1554_p5 = scmp.lt.s32.totalorder %s2074_s27, %s1552_s6  ;;  %p1555_p2 = scmp.lt.s32.totalorder %s1553_s1, %s1547_s4 }
 0x260   : > { %s2072_s19 = scalar_lea.hbm %s2204_s14, %s1141_s28  ;;  %p1550_p3 = pneg %p1549_p7 }
 0x261   : > { %p1556_p8 = por %p1555_p2, %p1554_p5 }
 0x263   : > { %p1557_p11 = pnand %p1556_p8, %p1550_p3 }
 0x2bd   : > { %v914_v15 = vpop.permute.xlu0 %913 }
 0x2be   : > { %v916_v16 = vmul.f32 %v1342_v9, %v914_v15 }
 0x2c0   : > { %920 = vrot.lane.b32.xlu1 %v916_v16, %s1645_s29 }
 0x332   : > { %v921_v17 = vpop.permute.xlu1 %920 }
 0x333   : > { %923 = vst.msk [vmem:[%s549_s5] sm:$0x1] %vm917_vm3, %v921_v17 }
 0x334   : > { %1560 = shalt.err (!%p1557_p11)
}
 0x335   : > { %s1561_s11 = scalar_lea.hbm %s2072_s19, 16  ;;  %s1565_s13 = scalar_lea.hbm %s2204_s14, 32 }
 0x336   : > { %p1562_p12 = scmp.ne.s32.totalorder %s2072_s19, %s1561_s11  ;;  %p1566_p10 = scmp.lt.u32.totalorder %s2072_s19, %s2204_s14 }
 0x337   : > { %p1567_p4 = scmp.lt.u32.totalorder %s1565_s13, %s1561_s11  ;;  %p1569_p13 = scmp.lt.u32.totalorder %s1561_s11, %s2072_s19 }
 0x338   : > { %p1563_p1 = pnand %p1562_p12, %p2203_p0 }
 0x339   : > { %p1568_p9 = por %p1567_p4, %p1566_p10 }
 0x33a   : > { %p1564_p6 = pneg %p1563_p1 }
 0x33b   : > { %p1570_p7 = por %p1569_p13, %p1568_p9 }
 0x33d   : > { %p1571_p3 = pnand %p1570_p7, %p1564_p6 }
 0x33f   : > { %1574 = shalt.err (!%p1571_p3)
}
 0x340   : > { %1252 = dma.vmem_to_hbm [thread:$0]  (%p2203_p0), %s2074_s27, 16, %s2072_s19, %s929_s8  }
 0x341 PF: > { %s2205_s20 = sld [smem:[#allocation22_spill]]  ;;  %s2206_s10 = sld [smem:[#allocation24_spill]] }
 0x342   : > { %p2208_p2 = scmp.ge.s32.totalorder %s1629_s24, 2 }
 0x347   : > { %s966_s26 = sand.u32 1, %s2205_s20   ;;  %p2207_p5 = scmp.ne.s32.totalorder %s2206_s10, 0 }
 0x348   : > { %s967_s21 = scalar_lea.sflag [#allocation4], %s966_s26 }
 0x349   : > { %p1276_p8 = pnand %p2208_p2, %p2207_p5 }
 0x34b   : > { %1608 = dma.done.wait (!%p1276_p8), %s967_s21, 16  }
 0x34c   : > { %1610 = vsyncadd (!%p1276_p8), %s967_s21, 4294967280  ;;  %s975_s29 = scalar_lea.sflag [#allocation15], %s966_s26 }
 0x34d   : > { %1612 = dma.done.wait (!%p1276_p8), %s975_s29, 16  }
 0x34e   : > { %1614 = vsyncadd (!%p1276_p8), %s975_s29, 4294967280  ;;  %s2209_s24 = sld [smem:[#allocation25_spill]]  ;;  %s2210_s16 = sld [smem:[#allocation23_spill]] }
 0x34f   : > { %s2211_s23 = sld [smem:[#allocation26_spill]]  ;;  %s2212_s21 = smov %s1621_s22 }
 0x354   : > { %p34_p0 = scmp.ge.s32.totalorder %s2209_s24, 4   ;;  %s2213_s22 = smov %s2210_s16 }
 0x356   :  { %36 = sbr.rel (!%p34_p0) target bundleno = 20 (0x14), region = 162 }
 0x35d   :  { %979 = vsyncpa [#allocation3], 1 }
 0x35e   :  { %981 = vsyncpa [#allocation3 + $0x1], 1 }
 0x35f   :  { %982 = vsyncpa [#allocation6], 1 }
 0x360   :  { %984 = vsyncpa [#allocation6 + $0x1], 1 }
 0x361   :  { %985 = vsyncpa [#allocation9], 1 }
 0x362   :  { %986 = vsyncpa [#allocation12], 1 }
 0x363   :  { %987 = vsyncpa [#allocation4], 1 }
 0x364   :  { %989 = vsyncpa [#allocation4 + $0x1], 1 }
 0x365   :  { %990 = vsyncpa [#allocation15], 1 }
 0x366   :  { %992 = vsyncpa [#allocation15 + $0x1], 1 }

</bundles_post_ra>
